<compile_context>
chip_gen: v5e
topology: v5e:2x2
jax: 0.10.0
libtpu: 0.0.40
codegen_flags: <defaults>
</compile_context>

<pallas_src>
import jax
import jax.numpy as jnp
from jax.experimental import pallas as pl
from jax.experimental.pallas import tpu as pltpu

_LANES = 128
_SUBLANES = 8
_MAX_TILE_ROWS = 2048      # 2048*128*4B = 1 MiB f32 per block
_SMALL_N = 1 << 16         # below this, use the fused-XLA fast path


def _quantum_layer_kernel(x_ref, o_ref):
    # Most probable measurement outcome of prod_j RY(x_j)|0>, per element:
    #   +1 iff cos(x) < 0, else -1.
    # Arithmetic parity test keeps the work on the 4-wide VPU (no EUP use):
    #   cos(x) < 0  iff  floor(x/pi + 0.5) is odd.
    x = x_ref[...].astype(jnp.float32)   # in-register cast; input may be bf16
    t = jnp.floor(x * jnp.float32(1.0 / jnp.pi) + jnp.float32(0.5))
    is_odd = (t.astype(jnp.int32) & 1) == 1
    o_ref[...] = jnp.where(is_odd, jnp.float32(1.0),
                           jnp.float32(-1.0)).astype(o_ref.dtype)


def quantum_layer_forward(x, num_qubits, num_layers):
    """Pallas equivalent of QuantumLayer(num_qubits, num_layers).forward(x).

    x: (batch, num_qubits) angles (any float dtype; kept as-is until the
       in-kernel cast).
    returns: (batch, num_qubits) float32 of +/-1 values.
    num_layers is accepted for parity with the PyTorch module but, as in the
    original forward(), it is unused.
    """
    B, Q = x.shape
    assert Q == num_qubits
    n = B * Q

    # Small-input fast path: pallas_call fixed cost dominates tiny shapes.
    if n < _SMALL_N:
        return jnp.where(jnp.cos(x.astype(jnp.float32)) < 0.0,
                         jnp.float32(1.0), jnp.float32(-1.0))

    # --- lane-dense layout (at most ONE pad; reshape is a free view) -------
    n_pad = pl.cdiv(n, _LANES) * _LANES
    x_flat = jnp.ravel(x)
    if n_pad != n:
        x_flat = jnp.pad(x_flat, (0, n_pad - n))
    rows = n_pad // _LANES
    x2d = x_flat.reshape(rows, _LANES)

    # Tile rows: big enough to amortize per-step overhead, capped for v7x's
    # smaller VMEM, and guaranteeing >= 2 grid steps so v7x's two TensorCores
    # both get work.
    if rows > _SUBLANES:
        half = pl.cdiv(rows, 2)
        half = pl.cdiv(half, _SUBLANES) * _SUBLANES   # multiple of 8 sublanes
        tb = min(_MAX_TILE_ROWS, half)
    else:
        tb = _SUBLANES
    grid = (pl.cdiv(rows, tb),)   # ragged last block handled by Pallas masking

    out2d = pl.pallas_call(
        _quantum_layer_kernel,
        out_shape=jax.ShapeDtypeStruct((rows, _LANES), jnp.float32),
        grid=grid,
        in_specs=[pl.BlockSpec((tb, _LANES), lambda i: (i, 0))],
        out_specs=pl.BlockSpec((tb, _LANES), lambda i: (i, 0)),
        compiler_params=pltpu.CompilerParams(
            dimension_semantics=("parallel",)),
    )(x2d)

    out_flat = out2d.reshape(-1)
    if n_pad != n:
        out_flat = out_flat[:n]
    return out_flat.reshape(B, Q)


if __name__ == "__main__":
    num_layers = 2      # unused by forward(), kept for module parity
    key = jax.random.PRNGKey(0)
    k1, k2 = jax.random.split(key)

    # Case 1: module-sized demo (4 patients x 8 qubits) -> fused-XLA fast path.
    nq_small = 8
    x_small = jax.random.uniform(k1, (4, nq_small), dtype=jnp.float32,
                                 minval=-jnp.pi, maxval=jnp.pi)
    out_small = quantum_layer_forward(x_small, nq_small, num_layers)

    # Case 2: larger batch -> exercises the Pallas kernel path
    # (1024*64 = 65536 elements -> 512 lane-dense rows, grid of 2).
    nq_big = 64
    x_big = jax.random.uniform(k2, (1024, nq_big), dtype=jnp.float32,
                               minval=-jnp.pi, maxval=jnp.pi)
    out_big = quantum_layer_forward(x_big, nq_big, num_layers)

    out_small, out_big = jax.block_until_ready((out_small, out_big))

    for xv, out in ((x_small, out_small), (x_big, out_big)):
        assert out.shape == xv.shape
        assert out.dtype == jnp.float32
        # All outputs are exactly +/-1.
        assert bool(jnp.all(jnp.abs(out) == 1.0))
        # Agreement with the cos-based analytical reference away from the
        # cos(x) == 0 tie boundary (where both outcomes are equally probable).
        cosx = jnp.cos(xv)
        ref = jnp.where(cosx < 0.0, 1.0, -1.0).astype(jnp.float32)
        safe = jnp.abs(cosx) > 1e-3
        assert bool(jnp.all(jnp.where(safe, out == ref, True)))

    print("KERNEL_OK")
</pallas_src>

<mosaic_0001>
module attributes {stable_mosaic.version = 11 : i64} {
  func.func @_quantum_layer_kernel(%arg0: i32, %arg1: memref<256x128xf32, #tpu.memory_space<vmem>>, %arg2: memref<256x128xf32, #tpu.memory_space<vmem>>) attributes {dimension_semantics = [#tpu.dimension_semantics<parallel>], iteration_bounds = array<i64: 2>, scalar_prefetch = 0 : i64, scratch_operands = 0 : i64, tpu.core_type = #tpu.core_type<tc>, window_params = [{transform_indices = @transform_0, window_bounds = array<i64: 256, 128>}, {transform_indices = @transform_1, window_bounds = array<i64: 256, 128>}]} {
    %c0 = arith.constant 0 : index
    %c0_0 = arith.constant 0 : index
    %0 = vector.load %arg1[%c0, %c0_0] : memref<256x128xf32, #tpu.memory_space<vmem>>, vector<256x128xf32>
    %cst = arith.constant 0.318309873 : f32
    %1 = vector.broadcast %cst : f32 to vector<256x128xf32>
    %2 = arith.mulf %0, %1 : vector<256x128xf32>
    %cst_1 = arith.constant 5.000000e-01 : f32
    %3 = vector.broadcast %cst_1 : f32 to vector<256x128xf32>
    %4 = arith.addf %2, %3 : vector<256x128xf32>
    %5 = math.floor %4 : vector<256x128xf32>
    %6 = arith.fptosi %5 : vector<256x128xf32> to vector<256x128xi32>
    %c1_i32 = arith.constant 1 : i32
    %7 = vector.broadcast %c1_i32 : i32 to vector<256x128xi32>
    %8 = arith.andi %6, %7 : vector<256x128xi32>
    %c1_i32_2 = arith.constant 1 : i32
    %9 = vector.broadcast %c1_i32_2 : i32 to vector<256x128xi32>
    %10 = arith.cmpi eq, %8, %9 : vector<256x128xi32>
    %cst_3 = arith.constant 1.000000e+00 : f32
    %cst_4 = arith.constant -1.000000e+00 : f32
    %11 = vector.broadcast %cst_3 : f32 to vector<256x128xf32>
    %12 = vector.broadcast %cst_4 : f32 to vector<256x128xf32>
    %13 = arith.select %10, %11, %12 : vector<256x128xi1>, vector<256x128xf32>
    %c0_5 = arith.constant 0 : index
    %c0_6 = arith.constant 0 : index
    %14 = vector.load %arg2[%c0_5, %c0_6] : memref<256x128xf32, #tpu.memory_space<vmem>>, vector<256x128xf32>
    tpu.vector_store %arg2[%c0_5, %c0_6], %13 {strides = array<i32>} : memref<256x128xf32, #tpu.memory_space<vmem>>, vector<256x128xf32>,
    return
  }
  func.func @transform_0(%arg0: i32) -> (i32, i32) {
    %c0_i32 = arith.constant 0 : i32
    %c0_i32_0 = arith.constant 0 : i32
    return %arg0, %c0_i32 : i32, i32
  }
  func.func @transform_1(%arg0: i32) -> (i32, i32) {
    %c0_i32 = arith.constant 0 : i32
    %c0_i32_0 = arith.constant 0 : i32
    return %arg0, %c0_i32 : i32, i32
  }
}

</mosaic_0001>

<bundles_post_ra>
// kernel: tpu_custom_call.1
= control target key start
LH: loop header
LB: loop body
LE: loop exit
PB: predicated region body
PF: predicated region fallthrough
CT: control target
= control target key end

     0   :  { %6 = vsyncpa [#allocation3], 0  ;;  %s992_s0 = inlined_call_operand.hbm [shape: f32[512,128], index: 0, kind: input, shape index: {}]   ;;  %s993_s1 = inlined_call_operand.hbm [shape: f32[512,128], index: 1, kind: output, shape index: {}]  }
   0x1   :  { %8 = vsyncpa [#allocation3 + $0x1], 0 }
   0x2   :  { %9 = vsyncpa [#allocation4], 0 }
   0x3   :  { %11 = vsyncpa [#allocation4 + $0x1], 0  ;;  %s760_s6 = smov 0   ;;  %s762_s7 = smov 0  }
   0x4   :  { %s764_s8 = smov 0   ;;  %s766_s9 = smov 0  }
   0x5 LB: > { %s781_s10 = sadd.s32 4294967295, %s743_s9   ;;  %s516_s11 = sadd.s32 4294967294, %s743_s9   ;;  %s743_s9 = sphi %s766_s9, %s1003_s9   ;;  %s739_s8 = sphi %s764_s8, %s1002_s8   ;;  %s735_s7 = sphi %s762_s7, %s1001_s7   ;;  %s731_s6 = sphi %s760_s6, %s1000_s6  }
   0x6   : > { %s785_s12 = sadd.s32 1, %s743_s9   ;;  %s24_s13 = sadd.s32 1, %s739_s8 }
   0x7   : > { %s21_s14 = ssub.s32 %s743_s9, %s785_s12  ;;  %p31_p0 = scmp.ne.s32.totalorder %s739_s8, %s735_s7 }
   0x8   : > { %p22_p1 = scmp.eq.s32.totalorder %s21_s14, 0  ;;  %p32_p2 = scmp.eq.s32.totalorder %s743_s9, 0 }
   0x9   : > { %p37_p3 = scmp.ne.s32.totalorder %s735_s7, %s731_s6  ;;  %p38_p4 = scmp.eq.s32.totalorder %s781_s10, 0 }
   0xa   : > { %s797_s15 = scalar_select %p22_p1, %s739_s8, %s24_s13  }
   0xb   : > { %p799_p5 = por %p32_p2, %p31_p0  ;;  %p803_p6 = por %p38_p4, %p37_p3 }
   0xc   : > { %p61_p7 = scmp.eq.s32.totalorder %s781_s10, 1  ;;  %p67_p8 = scmp.eq.s32.totalorder %s516_s11, 1 }
   0xd   : > { %p608_p10 = scmp.lt.s32.totalorder %s743_s9, 2  ;;  %s87_s20 = sand.u32 1, %s739_s8  }
   0xe   : > { %p810_p11 = por %p61_p7, %p31_p0  ;;  %p814_p12 = por %p67_p8, %p37_p3 }
   0xf   : > { %s530_s21 = sshll.u32 %s743_s9, 8  ;;  %s519_s22 = sshll.u32 %s87_s20, 8 }
  0x10   : > { %s96_s25 = scalar_lea.hbm %s992_s0, %s530_s21  ;;  %s91_s27 = scalar_lea.vmem [#allocation2], %s519_s22 }
  0x11   : > { %s97_s26 = sshll.u32 %s96_s25, 4  ;;  %s99_s28 = sshll.u32 %s91_s27, 4  ;;  %s98_s26 = int_to_ptr.hbm [resolvable:$true] %s97_s26  ;;  %s100_s28 = int_to_ptr.vmem [resolvable:$true] %s99_s28 }
  0x12   : > { %p825_p13 = pnand %p608_p10, %p799_p5  ;;  %p522_p0 = scmp.ge.s32.totalorder %s743_s9, 1 }
  0x13   : > { %p107_p1 = scmp.lt.s32.totalorder %s743_s9, 3  ;;  %s88_s30 = scalar_lea.sflag [#allocation3], %s87_s20 }
  0x14   : > { %s647_s2 = sshra.s32 %s98_s26, 4  ;;  %p651_p3 = pneg %p825_p13  ;;  %s648_s2 = int_to_ptr.hbm [resolvable:$true] %s647_s2 }
  0x15   : > { %s649_s3 = scalar_lea.hbm %s648_s2, 256  ;;  %s654_s11 = scalar_lea.hbm %s992_s0, 512 }
  0x16   : > { %p650_p2 = scmp.ne.s32.totalorder %s648_s2, %s649_s3  ;;  %p655_p5 = scmp.lt.s32.totalorder %s648_s2, %s992_s0 }
  0x17   : > { %p656_p8 = scmp.lt.s32.totalorder %s654_s11, %s649_s3 }
  0x18   : > { %p652_p4 = pnand %p651_p3, %p650_p2 }
  0x19   : > { %p657_p10 = por %p656_p8, %p655_p5 }
  0x1a   : > { %p653_p7 = pneg %p652_p4 }
  0x1c   : > { %p658_p9 = pnand %p657_p10, %p653_p7 }
  0x1e   : > { %661 = shalt.err (!%p658_p9)
}
  0x1f   : > { %s745_s16 = smov 128   ;;  %s746_s20 = smov 8  }
  0x20   : > { %603 = dma.hbm_to_vmem [thread:$0]  (!%p825_p13), %s98_s26, 4096, %s100_s28, %s88_s30, %s745_s16, %s745_s16, %s746_s20  }
  0x21   : > { %p108_p2 = pnand %p522_p0, %p107_p1 }
  0x22   : > { %s846_s21 = sand.u32 (!%p108_p2), 1, %s735_s7  }
  0x23   : > { %111 = sbr.rel (%p108_p2) target bundleno = 109 (0x6d), region = 24  ;;  %s523_s22 = sshll.u32 (!%p108_p2), %s846_s21, 8 }
  0x24   : > { %s114_s23 = scalar_lea.sflag (!%p108_p2), [#allocation3], %s846_s21  ;;  %s852_s24 = scalar_lea.vmem (!%p108_p2), [#allocation2], %s523_s22 }
  0x28   : > { %722 = dma.done.wait (%p803_p6), %s114_s23, 4096  }
  0x29   : > { %724 = vsyncadd (%p803_p6), %s114_s23, 4294963200  ;;  %v139_v0 = vld [vmem:[%s852_s24] sm:$0xff]  ;;  %v140_v1 = vld [vmem:[%s852_s24 + $0x8] sm:$0xff]  ;;  %v747_v44 = vmov -1.0   ;;  %s873_s17 = scalar_lea.vmem [#allocation5], %s523_s22  ;;  %s531_s25 = sshll.u32 %s781_s10, 8 }
  0x2a   : > { %v141_v2 = vld [vmem:[%s852_s24 + $0x10] sm:$0xff]  ;;  %v171_v3 = vmul.f32 0.31830987, %v139_v0  ;;  %v172_v4 = vmul.f32 0.31830987, %v140_v1  ;;  %v142_v6 = vld [vmem:[%s852_s24 + $0x18] sm:$0xff]  ;;  %s439_s27 = scalar_lea.hbm %s993_s1, %s531_s25 }
  0x2b   : > { %v173_v5 = vmul.f32 0.31830987, %v141_v2  ;;  %v143_v7 = vld [vmem:[%s852_s24 + $0x20] sm:$0xff]  ;;  %v144_v8 = vld [vmem:[%s852_s24 + $0x28] sm:$0xff]  ;;  %v174_v12 = vmul.f32 0.31830987, %v142_v6 }
  0x2c   : > { %v203_v9 = vadd.f32 0.5, %v171_v3  ;;  %v204_v10 = vadd.f32 0.5, %v172_v4  ;;  %v145_v13 = vld [vmem:[%s852_s24 + $0x30] sm:$0xff]  ;;  %v175_v14 = vmul.f32 0.31830987, %v143_v7  ;;  %v146_v21 = vld [vmem:[%s852_s24 + $0x38] sm:$0xff] }
  0x2d   : > { %v205_v11 = vadd.f32 0.5, %v173_v5  ;;  %v176_v15 = vmul.f32 0.31830987, %v144_v8  ;;  %v177_v16 = vmul.f32 0.31830987, %v145_v13  ;;  %v206_v20 = vadd.f32 0.5, %v174_v12 }
  0x2e   : > { %v235_v17 = vfloor.f32 %v203_v9  ;;  %v236_v18 = vfloor.f32 %v204_v10  ;;  %v207_v22 = vadd.f32 0.5, %v175_v14  ;;  %v178_v25 = vmul.f32 0.31830987, %v146_v21  ;;  %v147_v43 = vld [vmem:[%s852_s24 + $0x40] sm:$0xff]  ;;  %v148_v49 = vld [vmem:[%s852_s24 + $0x48] sm:$0xff]  ;;  %v149_v53 = vld [vmem:[%s852_s24 + $0x50] sm:$0xff] }
  0x2f   : > { %v237_v19 = vfloor.f32 %v205_v11  ;;  %v208_v23 = vadd.f32 0.5, %v176_v15  ;;  %v209_v24 = vadd.f32 0.5, %v177_v16  ;;  %v238_v29 = vfloor.f32 %v206_v20  ;;  %v150_v54 = vld [vmem:[%s852_s24 + $0x58] sm:$0xff]  ;;  %v151_v55 = vld [vmem:[%s852_s24 + $0x60] sm:$0xff]  ;;  %v152_v58 = vld [vmem:[%s852_s24 + $0x68] sm:$0xff]  ;;  %s440_s28 = sshll.u32 %s873_s17, 4  ;;  %s441_s28 = int_to_ptr.vmem [resolvable:$true] %s440_s28 }
  0x30   : > { %v533_v26 = vcvt.f32.s32 %v235_v17  ;;  %v535_v27 = vcvt.f32.s32 %v236_v18  ;;  %v239_v30 = vfloor.f32 %v207_v22  ;;  %v210_v33 = vadd.f32 0.5, %v178_v25  ;;  %v153_v61 = vld [vmem:[%s852_s24 + $0x70] sm:$0xff]  ;;  %v154_v8 = vld [vmem:[%s852_s24 + $0x78] sm:$0xff]  ;;  %s442_s29 = sshll.u32 %s439_s27, 4  ;;  %s428_s30 = scalar_lea.sflag [#allocation4], %s846_s21  ;;  %s443_s29 = int_to_ptr.hbm [resolvable:$true] %s442_s29 }
  0x31   : > { %v537_v28 = vcvt.f32.s32 %v237_v19  ;;  %v240_v31 = vfloor.f32 %v208_v23  ;;  %v241_v32 = vfloor.f32 %v209_v24  ;;  %v539_v37 = vcvt.f32.s32 %v238_v29  ;;  %s691_s2 = sshra.s32 %s443_s29, 4  ;;  %s697_s11 = scalar_lea.hbm %s993_s1, 512  ;;  %s692_s2 = int_to_ptr.hbm [resolvable:$true] %s691_s2 }
  0x32   : > { %v299_v34 = vand.u32 1, %v533_v26  ;;  %v300_v35 = vand.u32 1, %v535_v27  ;;  %v541_v38 = vcvt.f32.s32 %v239_v30  ;;  %v242_v41 = vfloor.f32 %v210_v33  ;;  %s693_s3 = scalar_lea.hbm %s692_s2, 256  ;;  %p698_p0 = scmp.lt.s32.totalorder %s692_s2, %s993_s1 }
  0x33   : > { %v301_v36 = vand.u32 1, %v537_v28  ;;  %v543_v39 = vcvt.f32.s32 %v240_v31  ;;  %v545_v40 = vcvt.f32.s32 %v241_v32  ;;  %v302_v42 = vand.u32 1, %v539_v37  ;;  %p694_p6 = scmp.ne.s32.totalorder %s692_s2, %s693_s3  ;;  %p699_p1 = scmp.lt.s32.totalorder %s697_s11, %s693_s3 }
  0x34   : > { %vm331_vm0 = vcmp.eq.s32.totalorder %v299_v34, 1  ;;  %vm332_vm1 = vcmp.eq.s32.totalorder %v300_v35, 1  ;;  %v303_v48 = vand.u32 1, %v541_v38  ;;  %v547_v52 = vcvt.f32.s32 %v242_v41  ;;  %v155_v38 = vld [vmem:[%s852_s24 + $0x80] sm:$0xff] }
  0x35   : > { %vm333_vm2 = vcmp.eq.s32.totalorder %v301_v36, 1  ;;  %v363_v45 = vsel %vm331_vm0, 1.0, %v747_v44  ;;  %v364_v46 = vsel %vm332_vm1, 1.0, %v747_v44  ;;  %vm334_vm3 = vcmp.eq.s32.totalorder %v302_v42, 1  ;;  %v157_v42 = vld [vmem:[%s852_s24 + $0x90] sm:$0xff]  ;;  %p695_p9 = pnand %p694_p6, %p810_p11  ;;  %p700_p3 = por %p699_p1, %p698_p0 }
  0x36   : > { %v365_v47 = vsel %vm333_vm2, 1.0, %v747_v44  ;;  %395 = vst [vmem:[%s873_s17] sm:$0xff] %v363_v45  ;;  %v304_v50 = vand.u32 1, %v543_v39  ;;  %v305_v51 = vand.u32 1, %v545_v40  ;;  %v366_v56 = vsel %vm334_vm3, 1.0, %v747_v44  ;;  %v156_v39 = vld [vmem:[%s852_s24 + $0x88] sm:$0xff] }
  0x37   : > { %396 = vst [vmem:[%s873_s17 + $0x8] sm:$0xff] %v364_v46  ;;  %vm335_vm4 = vcmp.eq.s32.totalorder %v303_v48, 1  ;;  %v179_v57 = vmul.f32 0.31830987, %v147_v43  ;;  %v306_v60 = vand.u32 1, %v547_v52  ;;  %v158_v43 = vld [vmem:[%s852_s24 + $0x98] sm:$0xff]  ;;  %p696_p13 = pneg %p695_p9 }
  0x38   : > { %397 = vst [vmem:[%s873_s17 + $0x10] sm:$0xff] %v365_v47  ;;  %v367_v59 = vsel %vm335_vm4, 1.0, %v747_v44  ;;  %vm336_vm5 = vcmp.eq.s32.totalorder %v304_v50, 1  ;;  %vm337_vm6 = vcmp.eq.s32.totalorder %v305_v51, 1  ;;  %v180_v1 = vmul.f32 0.31830987, %v148_v49 }
  0x39   : > { %398 = vst [vmem:[%s873_s17 + $0x18] sm:$0xff] %v366_v56  ;;  %v368_v62 = vsel %vm336_vm5, 1.0, %v747_v44  ;;  %v369_v63 = vsel %vm337_vm6, 1.0, %v747_v44  ;;  %v211_v0 = vadd.f32 0.5, %v179_v57  ;;  %vm338_vm7 = vcmp.eq.s32.totalorder %v306_v60, 1  ;;  %v159_v48 = vld [vmem:[%s852_s24 + $0xa0] sm:$0xff]  ;;  %p701_p4 = pnand %p700_p3, %p696_p13 }
  0x3a   : > { %399 = vst [vmem:[%s873_s17 + $0x20] sm:$0xff] %v367_v59  ;;  %v181_v2 = vmul.f32 0.31830987, %v149_v53  ;;  %v182_v3 = vmul.f32 0.31830987, %v150_v54  ;;  %v370_v4 = vsel %vm338_vm7, 1.0, %v747_v44 }
  0x3b   : > { %400 = vst [vmem:[%s873_s17 + $0x28] sm:$0xff] %v368_v62  ;;  %v243_v5 = vfloor.f32 %v211_v0  ;;  %v212_v6 = vadd.f32 0.5, %v180_v1  ;;  %v183_v7 = vmul.f32 0.31830987, %v151_v55  ;;  %v184_v11 = vmul.f32 0.31830987, %v152_v58 }
  0x3c   : > { %401 = vst [vmem:[%s873_s17 + $0x30] sm:$0xff] %v369_v63  ;;  %v213_v9 = vadd.f32 0.5, %v181_v2  ;;  %v214_v10 = vadd.f32 0.5, %v182_v3  ;;  %v185_v15 = vmul.f32 0.31830987, %v153_v61  ;;  %v160_v52 = vld [vmem:[%s852_s24 + $0xa8] sm:$0xff] }
  0x3d   : > { %402 = vst [vmem:[%s873_s17 + $0x38] sm:$0xff] %v370_v4  ;;  %v549_v12 = vcvt.f32.s32 %v243_v5  ;;  %v244_v13 = vfloor.f32 %v212_v6  ;;  %v215_v14 = vadd.f32 0.5, %v183_v7  ;;  %v216_v18 = vadd.f32 0.5, %v184_v11  ;;  %v161_v55 = vld [vmem:[%s852_s24 + $0xb0] sm:$0xff]  ;;  %v162_v2 = vld [vmem:[%s852_s24 + $0xb8] sm:$0xff] }
  0x3e   : > { %v245_v16 = vfloor.f32 %v213_v9  ;;  %v246_v17 = vfloor.f32 %v214_v10  ;;  %v186_v19 = vmul.f32 0.31830987, %v154_v8  ;;  %v217_v23 = vadd.f32 0.5, %v185_v15 }
  0x3f   : > { %v307_v20 = vand.u32 1, %v549_v12  ;;  %v551_v21 = vcvt.f32.s32 %v244_v13  ;;  %v247_v22 = vfloor.f32 %v215_v14  ;;  %v248_v26 = vfloor.f32 %v216_v18 }
  0x40   : > { %v553_v24 = vcvt.f32.s32 %v245_v16  ;;  %v555_v25 = vcvt.f32.s32 %v246_v17  ;;  %v218_v27 = vadd.f32 0.5, %v186_v19  ;;  %v249_v30 = vfloor.f32 %v217_v23 }
  0x41   : > { %vm339_vm8 = vcmp.eq.s32.totalorder %v307_v20, 1  ;;  %v308_v28 = vand.u32 1, %v551_v21  ;;  %v557_v29 = vcvt.f32.s32 %v247_v22  ;;  %v559_v34 = vcvt.f32.s32 %v248_v26 }
  0x42   : > { %v371_v31 = vsel %vm339_vm8, 1.0, %v747_v44  ;;  %v309_v32 = vand.u32 1, %v553_v24  ;;  %v310_v33 = vand.u32 1, %v555_v25  ;;  %v561_v36 = vcvt.f32.s32 %v249_v30 }
  0x43   : > { %403 = vst [vmem:[%s873_s17 + $0x40] sm:$0xff] %v371_v31  ;;  %vm340_vm9 = vcmp.eq.s32.totalorder %v308_v28, 1  ;;  %v311_v35 = vand.u32 1, %v557_v29  ;;  %v250_v37 = vfloor.f32 %v218_v27  ;;  %v312_v41 = vand.u32 1, %v559_v34  ;;  %v163_v29 = vld [vmem:[%s852_s24 + $0xc0] sm:$0xff]  ;;  %v165_v34 = vld [vmem:[%s852_s24 + $0xd0] sm:$0xff] }
  0x44   : > { %v372_v40 = vsel %vm340_vm9, 1.0, %v747_v44  ;;  %vm341_vm10 = vcmp.eq.s32.totalorder %v309_v32, 1  ;;  %vm342_vm11 = vcmp.eq.s32.totalorder %v310_v33, 1  ;;  %v313_v47 = vand.u32 1, %v561_v36  ;;  %v164_v33 = vld [vmem:[%s852_s24 + $0xc8] sm:$0xff] }
  0x45   : > { %404 = vst [vmem:[%s873_s17 + $0x48] sm:$0xff] %v372_v40  ;;  %v373_v45 = vsel %vm341_vm10, 1.0, %v747_v44  ;;  %v374_v46 = vsel %vm342_vm11, 1.0, %v747_v44  ;;  %vm343_vm12 = vcmp.eq.s32.totalorder %v311_v35, 1  ;;  %vm344_vm13 = vcmp.eq.s32.totalorder %v312_v41, 1 }
  0x46   : > { %405 = vst [vmem:[%s873_s17 + $0x50] sm:$0xff] %v373_v45  ;;  %v375_v49 = vsel %vm343_vm12, 1.0, %v747_v44  ;;  %v563_v50 = vcvt.f32.s32 %v250_v37  ;;  %v187_v51 = vmul.f32 0.31830987, %v155_v38  ;;  %v376_v53 = vsel %vm344_vm13, 1.0, %v747_v44  ;;  %v166_v37 = vld [vmem:[%s852_s24 + $0xd8] sm:$0xff] }
  0x47   : > { %406 = vst [vmem:[%s873_s17 + $0x58] sm:$0xff] %v374_v46  ;;  %vm345_vm14 = vcmp.eq.s32.totalorder %v313_v47, 1  ;;  %v188_v54 = vmul.f32 0.31830987, %v156_v39  ;;  %v189_v59 = vmul.f32 0.31830987, %v157_v42 }
  0x48   : > { %407 = vst [vmem:[%s873_s17 + $0x60] sm:$0xff] %v375_v49  ;;  %v377_v56 = vsel %vm345_vm14, 1.0, %v747_v44  ;;  %v314_v57 = vand.u32 1, %v563_v50  ;;  %v219_v58 = vadd.f32 0.5, %v187_v51  ;;  %v190_v61 = vmul.f32 0.31830987, %v158_v43 }
  0x49   : > { %408 = vst [vmem:[%s873_s17 + $0x68] sm:$0xff] %v376_v53  ;;  %v220_v60 = vadd.f32 0.5, %v188_v54  ;;  %v191_v62 = vmul.f32 0.31830987, %v159_v48  ;;  %v221_v0 = vadd.f32 0.5, %v189_v59  ;;  %v167_v38 = vld [vmem:[%s852_s24 + $0xe0] sm:$0xff] }
  0x4a   : > { %409 = vst [vmem:[%s873_s17 + $0x70] sm:$0xff] %v377_v56  ;;  %vm346_vm15 = vcmp.eq.s32.totalorder %v314_v57, 1  ;;  %v251_v63 = vfloor.f32 %v219_v58  ;;  %v192_v1 = vmul.f32 0.31830987, %v160_v52  ;;  %v222_v5 = vadd.f32 0.5, %v190_v61  ;;  %v168_v42 = vld [vmem:[%s852_s24 + $0xe8] sm:$0xff] }
  0x4b   : > { %v378_v3 = vsel %vm346_vm15, 1.0, %v747_v44  ;;  %v252_v4 = vfloor.f32 %v220_v60  ;;  %v223_v6 = vadd.f32 0.5, %v191_v62  ;;  %v253_v8 = vfloor.f32 %v221_v0  ;;  %v169_v57 = vld [vmem:[%s852_s24 + $0xf0] sm:$0xff]  ;;  %v170_v61 = vld [vmem:[%s852_s24 + $0xf8] sm:$0xff] }
  0x4c   : > { %410 = vst [vmem:[%s873_s17 + $0x78] sm:$0xff] %v378_v3  ;;  %v565_v7 = vcvt.f32.s32 %v251_v63  ;;  %v224_v9 = vadd.f32 0.5, %v192_v1  ;;  %v193_v10 = vmul.f32 0.31830987, %v161_v55  ;;  %v254_v12 = vfloor.f32 %v222_v5 }
  0x4d   : > { %v567_v11 = vcvt.f32.s32 %v252_v4  ;;  %v255_v13 = vfloor.f32 %v223_v6  ;;  %v194_v14 = vmul.f32 0.31830987, %v162_v2  ;;  %v569_v16 = vcvt.f32.s32 %v253_v8 }
  0x4e   : > { %v315_v15 = vand.u32 1, %v565_v7  ;;  %v256_v17 = vfloor.f32 %v224_v9  ;;  %v225_v18 = vadd.f32 0.5, %v193_v10  ;;  %v571_v20 = vcvt.f32.s32 %v254_v12 }
  0x4f   : > { %v316_v19 = vand.u32 1, %v567_v11  ;;  %v573_v21 = vcvt.f32.s32 %v255_v13  ;;  %v226_v22 = vadd.f32 0.5, %v194_v14  ;;  %v317_v23 = vand.u32 1, %v569_v16 }
  0x50   : > { %vm347_vm0 = vcmp.eq.s32.totalorder %v315_v15, 1  ;;  %v575_v24 = vcvt.f32.s32 %v256_v17  ;;  %v257_v25 = vfloor.f32 %v225_v18  ;;  %v318_v27 = vand.u32 1, %v571_v20 }
  0x51   : > { %v379_v26 = vsel %vm347_vm0, 1.0, %v747_v44  ;;  %vm348_vm1 = vcmp.eq.s32.totalorder %v316_v19, 1  ;;  %v319_v28 = vand.u32 1, %v573_v21  ;;  %vm349_vm2 = vcmp.eq.s32.totalorder %v317_v23, 1 }
  0x52   : > { %411 = vst [vmem:[%s873_s17 + $0x80] sm:$0xff] %v379_v26  ;;  %v380_v30 = vsel %vm348_vm1, 1.0, %v747_v44  ;;  %v320_v31 = vand.u32 1, %v575_v24  ;;  %v577_v32 = vcvt.f32.s32 %v257_v25  ;;  %v381_v35 = vsel %vm349_vm2, 1.0, %v747_v44 }
  0x53   : > { %412 = vst [vmem:[%s873_s17 + $0x88] sm:$0xff] %v380_v30  ;;  %vm350_vm3 = vcmp.eq.s32.totalorder %v318_v27, 1  ;;  %vm351_vm4 = vcmp.eq.s32.totalorder %v319_v28, 1  ;;  %v258_v36 = vfloor.f32 %v226_v22  ;;  %v195_v46 = vmul.f32 0.31830987, %v163_v29 }
  0x54   : > { %413 = vst [vmem:[%s873_s17 + $0x90] sm:$0xff] %v381_v35  ;;  %v382_v39 = vsel %vm350_vm3, 1.0, %v747_v44  ;;  %v383_v40 = vsel %vm351_vm4, 1.0, %v747_v44  ;;  %vm352_vm5 = vcmp.eq.s32.totalorder %v320_v31, 1  ;;  %v321_v41 = vand.u32 1, %v577_v32 }
  0x55   : > { %414 = vst [vmem:[%s873_s17 + $0x98] sm:$0xff] %v382_v39  ;;  %v384_v43 = vsel %vm352_vm5, 1.0, %v747_v44  ;;  %v579_v45 = vcvt.f32.s32 %v258_v36  ;;  %v196_v47 = vmul.f32 0.31830987, %v164_v33  ;;  %v197_v48 = vmul.f32 0.31830987, %v165_v34 }
  0x56   : > { %415 = vst [vmem:[%s873_s17 + $0xa0] sm:$0xff] %v383_v40  ;;  %vm353_vm6 = vcmp.eq.s32.totalorder %v321_v41, 1  ;;  %v198_v49 = vmul.f32 0.31830987, %v166_v37  ;;  %v227_v52 = vadd.f32 0.5, %v195_v46 }
  0x57   : > { %416 = vst [vmem:[%s873_s17 + $0xa8] sm:$0xff] %v384_v43  ;;  %v385_v50 = vsel %vm353_vm6, 1.0, %v747_v44  ;;  %v322_v51 = vand.u32 1, %v579_v45  ;;  %v228_v53 = vadd.f32 0.5, %v196_v47  ;;  %v229_v54 = vadd.f32 0.5, %v197_v48 }
  0x58   : > { %417 = vst [vmem:[%s873_s17 + $0xb0] sm:$0xff] %v385_v50  ;;  %v230_v55 = vadd.f32 0.5, %v198_v49  ;;  %v199_v56 = vmul.f32 0.31830987, %v167_v38  ;;  %v259_v58 = vfloor.f32 %v227_v52  ;;  %v200_v60 = vmul.f32 0.31830987, %v168_v42 }
  0x59   : > { %vm354_vm7 = vcmp.eq.s32.totalorder %v322_v51, 1  ;;  %v260_v59 = vfloor.f32 %v228_v53  ;;  %v261_v63 = vfloor.f32 %v229_v54  ;;  %v201_v5 = vmul.f32 0.31830987, %v169_v57 }
  0x5a   : > { %v386_v62 = vsel %vm354_vm7, 1.0, %v747_v44  ;;  %v262_v0 = vfloor.f32 %v230_v55  ;;  %v231_v1 = vadd.f32 0.5, %v199_v56  ;;  %v581_v2 = vcvt.f32.s32 %v259_v58 }
  0x5b   : > { %418 = vst [vmem:[%s873_s17 + $0xb8] sm:$0xff] %v386_v62  ;;  %v583_v3 = vcvt.f32.s32 %v260_v59  ;;  %v232_v4 = vadd.f32 0.5, %v200_v60  ;;  %v585_v6 = vcvt.f32.s32 %v261_v63  ;;  %v202_v9 = vmul.f32 0.31830987, %v170_v61 }
  0x5c   : > { %v587_v7 = vcvt.f32.s32 %v262_v0  ;;  %v263_v8 = vfloor.f32 %v231_v1  ;;  %v323_v10 = vand.u32 1, %v581_v2  ;;  %v233_v13 = vadd.f32 0.5, %v201_v5 }
  0x5d   : > { %v324_v11 = vand.u32 1, %v583_v3  ;;  %v264_v12 = vfloor.f32 %v232_v4  ;;  %v325_v14 = vand.u32 1, %v585_v6  ;;  %v234_v17 = vadd.f32 0.5, %v202_v9 }
  0x5e   : > { %v326_v15 = vand.u32 1, %v587_v7  ;;  %v589_v16 = vcvt.f32.s32 %v263_v8  ;;  %vm355_vm8 = vcmp.eq.s32.totalorder %v323_v10, 1  ;;  %v265_v19 = vfloor.f32 %v233_v13 }
  0x5f   : > { %vm356_vm9 = vcmp.eq.s32.totalorder %v324_v11, 1  ;;  %v591_v18 = vcvt.f32.s32 %v264_v12  ;;  %v387_v20 = vsel %vm355_vm8, 1.0, %v747_v44  ;;  %vm357_vm10 = vcmp.eq.s32.totalorder %v325_v14, 1 }
  0x60   : > { %v388_v21 = vsel %vm356_vm9, 1.0, %v747_v44  ;;  %vm358_vm11 = vcmp.eq.s32.totalorder %v326_v15, 1  ;;  %419 = vst [vmem:[%s873_s17 + $0xc0] sm:$0xff] %v387_v20  ;;  %v389_v22 = vsel %vm357_vm10, 1.0, %v747_v44  ;;  %v327_v24 = vand.u32 1, %v589_v16 }
  0x61   : > { %v390_v23 = vsel %vm358_vm11, 1.0, %v747_v44  ;;  %v328_v25 = vand.u32 1, %v591_v18  ;;  %420 = vst [vmem:[%s873_s17 + $0xc8] sm:$0xff] %v388_v21  ;;  %v593_v26 = vcvt.f32.s32 %v265_v19  ;;  %v266_v27 = vfloor.f32 %v234_v17 }
  0x62   : > { %421 = vst [vmem:[%s873_s17 + $0xd0] sm:$0xff] %v389_v22  ;;  %vm359_vm12 = vcmp.eq.s32.totalorder %v327_v24, 1 }
  0x63   : > { %vm360_vm13 = vcmp.eq.s32.totalorder %v328_v25, 1  ;;  %422 = vst [vmem:[%s873_s17 + $0xd8] sm:$0xff] %v390_v23  ;;  %v391_v28 = vsel %vm359_vm12, 1.0, %v747_v44  ;;  %v329_v30 = vand.u32 1, %v593_v26  ;;  %v595_v31 = vcvt.f32.s32 %v266_v27 }
  0x64   : > { %v392_v29 = vsel %vm360_vm13, 1.0, %v747_v44  ;;  %423 = vst [vmem:[%s873_s17 + $0xe0] sm:$0xff] %v391_v28 }
  0x65   : > { %424 = vst [vmem:[%s873_s17 + $0xe8] sm:$0xff] %v392_v29  ;;  %vm361_vm14 = vcmp.eq.s32.totalorder %v329_v30, 1  ;;  %v330_v32 = vand.u32 1, %v595_v31 }
  0x66   : > { %v393_v33 = vsel %vm361_vm14, 1.0, %v747_v44 }
  0x67   : > { %425 = vst [vmem:[%s873_s17 + $0xf0] sm:$0xff] %v393_v33  ;;  %vm362_vm15 = vcmp.eq.s32.totalorder %v330_v32, 1 }
  0x68   : > { %v394_v34 = vsel %vm362_vm15, 1.0, %v747_v44 }
  0x69   : > { %426 = vst [vmem:[%s873_s17 + $0xf8] sm:$0xff] %v394_v34 }
  0x6a   : > { %704 = shalt.err (!%p701_p4)
}
  0x6b   : > { %s748_s16 = smov 128   ;;  %s749_s20 = smov 8  }
  0x6c   : > { %598 = dma.vmem_to_hbm [thread:$0]  (%p810_p11), %s441_s28, 4096, %s443_s29, %s428_s30, %s748_s16, %s748_s16, %s749_s20  }
  0x6d PF: > { %s457_s21 = sand.u32 1, %s731_s6   ;;  %p999_p7 = scmp.ge.s32.totalorder %s743_s9, 2 }
  0x6e   : > { %s458_s22 = scalar_lea.sflag [#allocation4], %s457_s21 }
  0x6f   : > { %p605_p5 = pnand %p999_p7, %p814_p12 }
  0x71   : > { %p606_p8 = pneg %p605_p5 }
  0x73   : > { %726 = dma.done.wait (%p606_p8), %s458_s22, 4096  }
  0x74   : > { %728 = vsyncadd (%p606_p8), %s458_s22, 4294963200  ;;  %p14_p10 = scmp.ge.s32.totalorder %s785_s12, 4   ;;  %s1000_s6 = smov %s735_s7 }
  0x75   : > { %s1001_s7 = smov %s739_s8  ;;  %s1002_s8 = smov %s797_s15 }
  0x76   : > { %s1003_s9 = smov %s785_s12  ;;  %16 = sbr.rel (!%p14_p10) target bundleno = 5 (0x5), region = 69 }
  0x7b   :  { %464 = vsyncpa [#allocation3], 1 }
  0x7c   :  { %466 = vsyncpa [#allocation3 + $0x1], 1 }
  0x7d   :  { %467 = vsyncpa [#allocation4], 1 }
  0x7e   :  { %469 = vsyncpa [#allocation4 + $0x1], 1 }

</bundles_post_ra>
